<compile_context>
chip_gen: v6e
topology: v6e:2x2x1
jax: 0.10.0
libtpu: 0.0.40
codegen_flags: <defaults>
</compile_context>

<pallas_src>
import math

import jax
import jax.numpy as jnp
from jax.experimental import pallas as pl
from jax.experimental.pallas import tpu as pltpu


def _round_up(x: int, m: int) -> int:
    return ((x + m - 1) // m) * m


def _pick_tile(dim_padded: int, granule: int, cap: int) -> int:
    """Largest multiple of `granule` that divides `dim_padded` and is <= cap.

    `dim_padded` is always a multiple of `granule`, so the result is valid and
    the grid has no remainder tiles (no whole-tile zero padding).
    """
    cap = max(granule, min(cap, dim_padded))
    best = granule
    t = granule
    while t <= cap:
        if dim_padded % t == 0:
            best = t
        t += granule
    return best


def _vmem_cap_bytes() -> int:
    """~75% of physical VMEM per TensorCore (conservative v7x fallback)."""
    try:
        cap = int(pltpu.get_tpu_info().vmem_capacity_bytes)
    except Exception:
        cap = 64 << 20  # v7x per-TC physical VMEM (worst case)
    return (cap * 3) // 4


def _linear_bias_kernel(x_ref, wt_ref, b_ref, o_ref):
    # x_ref : [TM, TK]  activations (compute dtype)
    # wt_ref: [TK, TN]  pre-transposed weight tile (native MXU RHS layout)
    # b_ref : [1,  TN]  f32 bias
    # o_ref : [TM, TN]  f32 output block, resident across the K grid axis
    k = pl.program_id(2)

    @pl.when(k == 0)
    def _():
        # Initialize the resident output block with the bias (added exactly once).
        o_ref[...] = jnp.broadcast_to(b_ref[...], o_ref.shape).astype(o_ref.dtype)

    o_ref[...] += jnp.dot(
        x_ref[...], wt_ref[...], preferred_element_type=jnp.float32
    )


class LinearOutputModule:
    """JAX/Pallas equivalent of the PyTorch LinearOutputModule."""

    def __init__(
        self,
        weight,                      # [O, D]  (PyTorch nn.Linear layout)
        bias,                        # [O]
        num_outputs_per_target,      # dict[str, int]
        *,
        compute_dtype=None,          # e.g. jnp.bfloat16 on v6e/v7x; None -> weight dtype
        tm_max: int = 512,
        tn_max: int = 512,
        tk_max: int = 2048,
        min_macs_for_pallas: int = 1 << 21,
    ):
        sorted_targets = sorted(num_outputs_per_target.items())
        self.target_names = tuple(n for n, _ in sorted_targets)
        self.target_sizes = [s for _, s in sorted_targets]

        O, D = weight.shape
        assert sum(self.target_sizes) == O
        self.D, self.O = D, O
        self.compute_dtype = (
            jnp.dtype(compute_dtype) if compute_dtype is not None else jnp.dtype(weight.dtype)
        )
        self.tm_max, self.tn_max, self.tk_max = tm_max, tn_max, tk_max
        self.min_macs = min_macs_for_pallas

        # --- one-time parameter prep (NOT in the per-call hot path) ---------
        # Transpose to [D, O] (MXU-native RHS), pad to lane/sublane granules,
        # cast to the compute dtype so the per-step DMA moves narrow data.
        self.D_p = _round_up(D, 128)
        self.O_p = _round_up(O, 128)
        self.w_t = jnp.pad(
            jnp.asarray(weight).T, ((0, self.D_p - D), (0, self.O_p - O))
        ).astype(self.compute_dtype)
        self.b_p = (
            jnp.pad(jnp.asarray(bias), (0, self.O_p - O))
            .astype(jnp.float32)
            .reshape(1, self.O_p)
        )

    # ------------------------------------------------------------------ #
    def _dense(self, inputs):
        B = inputs.shape[0]
        B_p = _round_up(B, 8)

        # Tiny problems: launch + padding overhead dominates -> plain XLA.
        if B_p * self.D_p * self.O_p < self.min_macs:
            w = self.w_t[: self.D, : self.O].astype(jnp.float32)
            return inputs.astype(jnp.float32) @ w + self.b_p[0, : self.O]

        # Hot path: only the (small) activation pad/cast happens per call.
        x_p = jnp.pad(inputs, ((0, B_p - B), (0, self.D_p - self.D))).astype(
            self.compute_dtype
        )

        TM = _pick_tile(B_p, 8, self.tm_max)
        TN = _pick_tile(self.O_p, 128, self.tn_max)
        TK = _pick_tile(self.D_p, 128, self.tk_max)

        # v7x megacore: keep at least one parallel grid axis with >= 2 blocks.
        if B_p // TM == 1 and self.O_p // TN == 1:
            if self.O_p // 128 >= 2:
                TN = _pick_tile(self.O_p, 128, max(TN // 2, 128))
            elif B_p // 8 >= 2:
                TM = _pick_tile(B_p, 8, max(TM // 2, 8))

        grid = (B_p // TM, self.O_p // TN, self.D_p // TK)

        # VMEM budget: double-buffered x / W / bias / output (no acc scratch),
        # plus headroom; capped at ~75% of physical VMEM for this generation.
        itemsize = jnp.dtype(self.compute_dtype).itemsize
        vmem_bytes = (
            2 * (TM * TK + TK * TN) * itemsize   # x + W streams
            + 2 * TN * 4                         # bias
            + 2 * TM * TN * 4                    # f32 output block
            + (2 << 20)                          # headroom
        )
        vmem_limit = int(min(max(vmem_bytes, 16 << 20), _vmem_cap_bytes()))

        out_p = pl.pallas_call(
            _linear_bias_kernel,
            out_shape=jax.ShapeDtypeStruct((B_p, self.O_p), jnp.float32),
            grid_spec=pltpu.PrefetchScalarGridSpec(
                num_scalar_prefetch=0,
                grid=grid,
                in_specs=[
                    pl.BlockSpec((TM, TK), lambda i, j, k: (i, k)),   # x
                    pl.BlockSpec((TK, TN), lambda i, j, k: (k, j)),   # W^T [D, O]
                    pl.BlockSpec((1, TN), lambda i, j, k: (0, j)),    # bias
                ],
                out_specs=pl.BlockSpec((TM, TN), lambda i, j, k: (i, j)),
            ),
            compiler_params=pltpu.CompilerParams(
                dimension_semantics=("parallel", "parallel", "arbitrary"),
                vmem_limit_bytes=vmem_limit,
            ),
        )(x_p, self.w_t, self.b_p)

        return out_p[:B, : self.O]

    # ------------------------------------------------------------------ #
    def __call__(self, inputs):
        out = self._dense(inputs)
        # torch.split(outputs, target_sizes, dim=1) -> dict (cheap slicing glue).
        result = {}
        off = 0
        for name, size in zip(self.target_names, self.target_sizes):
            result[name] = out[:, off : off + size]
            off += size
        return result


# ---------------------------------------------------------------------- #
def _make_params(key, in_dim, out_dim):
    """nn.Linear-style uniform(-1/sqrt(D), 1/sqrt(D)) init."""
    k_w, k_b = jax.random.split(key)
    bound = 1.0 / math.sqrt(in_dim)
    w = jax.random.uniform(k_w, (out_dim, in_dim), jnp.float32, -bound, bound)
    b = jax.random.uniform(k_b, (out_dim,), jnp.float32, -bound, bound)
    return w, b


def _reference(x, w, b, names, sizes):
    full = x.astype(jnp.float32) @ w.T.astype(jnp.float32) + b
    out, off = {}, 0
    for n, s in zip(names, sizes):
        out[n] = full[:, off : off + s]
        off += s
    return out


if __name__ == "__main__":
    key = jax.random.PRNGKey(0)
    k1, k2, k3, k4 = jax.random.split(key, 4)

    # ---- Test 1: original toy config (B=2, D=32, O=8) -> XLA fallback path.
    toy_targets = {"height": 1, "origin": 3, "status": 4}
    w_t1, b_t1 = _make_params(k1, 32, sum(toy_targets.values()))
    mod_tiny = LinearOutputModule(w_t1, b_t1, toy_targets)
    x_tiny = jax.random.normal(k2, (2, 32), jnp.float32)
    out_tiny = mod_tiny(x_tiny)
    jax.block_until_ready(out_tiny)
    ref_tiny = _reference(x_tiny, w_t1, b_t1, mod_tiny.target_names, mod_tiny.target_sizes)
    for n in mod_tiny.target_names:
        assert out_tiny[n].shape == ref_tiny[n].shape
        assert jnp.allclose(out_tiny[n], ref_tiny[n], atol=1e-5, rtol=1e-5)

    # ---- Test 2: Pallas path, small shapes but caps shrunk so the full
    # (M, N, K) grid (2, 3, 2) — including the K accumulation and the
    # bias-once init — is exercised.
    targets = {"a": 128, "b": 192, "c": 64}     # O = 384
    w2, b2 = _make_params(k3, 256, sum(targets.values()))
    mod = LinearOutputModule(
        w2, b2, targets, tm_max=32, tn_max=128, tk_max=128, min_macs_for_pallas=1 << 20
    )
    x = jax.random.normal(k4, (64, 256), jnp.float32)
    out = mod(x)
    jax.block_until_ready(out)
    ref = _reference(x, w2, b2, mod.target_names, mod.target_sizes)
    for n in mod.target_names:
        assert out[n].shape == ref[n].shape
        assert jnp.allclose(out[n], ref[n], atol=1e-3, rtol=1e-3)

    # ---- Test 3: bf16 compute path (f32 accumulation) — the v6e/v7x fast path.
    mod_bf16 = LinearOutputModule(
        w2, b2, targets, compute_dtype=jnp.bfloat16,
        tm_max=32, tn_max=128, tk_max=128, min_macs_for_pallas=1 << 20,
    )
    out_bf16 = mod_bf16(x)
    jax.block_until_ready(out_bf16)
    for n in mod.target_names:
        assert out_bf16[n].shape == ref[n].shape
        assert jnp.allclose(out_bf16[n], ref[n], atol=5e-2, rtol=5e-2)

    print("KERNEL_OK")
</pallas_src>

<mosaic_0001>
module attributes {stable_mosaic.version = 11 : i64} {
  func.func @_linear_bias_kernel(%arg0: i32, %arg1: i32, %arg2: i32, %arg3: memref<32x128xf32, #tpu.memory_space<vmem>>, %arg4: memref<128x128xf32, #tpu.memory_space<vmem>>, %arg5: memref<1x128xf32, #tpu.memory_space<vmem>>, %arg6: memref<32x128xf32, #tpu.memory_space<vmem>>) attributes {dimension_semantics = [#tpu.dimension_semantics<parallel>, #tpu.dimension_semantics<parallel>, #tpu.dimension_semantics<arbitrary>], iteration_bounds = array<i64: 2, 3, 2>, scalar_prefetch = 0 : i64, scratch_operands = 0 : i64, tpu.core_type = #tpu.core_type<tc>, window_params = [{transform_indices = @transform_0, window_bounds = array<i64: 32, 128>}, {transform_indices = @transform_1, window_bounds = array<i64: 128, 128>}, {transform_indices = @transform_2, window_bounds = array<i64: 1, 128>}, {transform_indices = @transform_3, window_bounds = array<i64: 32, 128>}]} {
    %c0_i32 = arith.constant 0 : i32
    %0 = arith.cmpi eq, %arg2, %c0_i32 : i32
    %1 = arith.extui %0 : i1 to i32
    %c0_i32_0 = arith.constant 0 : i32
    %2 = arith.cmpi ne, %1, %c0_i32_0 : i32
    scf.if %2 {
      %c0_8 = arith.constant 0 : index
      %c0_9 = arith.constant 0 : index
      %9 = vector.load %arg5[%c0_8, %c0_9] : memref<1x128xf32, #tpu.memory_space<vmem>>, vector<1x128xf32>
      %10 = vector.shape_cast %9 : vector<1x128xf32> to vector<1x128xf32>
      %11 = vector.broadcast %10 : vector<1x128xf32> to vector<32x128xf32>
      %c0_10 = arith.constant 0 : index
      %c0_11 = arith.constant 0 : index
      %12 = vector.load %arg6[%c0_10, %c0_11] : memref<32x128xf32, #tpu.memory_space<vmem>>, vector<32x128xf32>
      tpu.vector_store %arg6[%c0_10, %c0_11], %11 {strides = array<i32>} : memref<32x128xf32, #tpu.memory_space<vmem>>, vector<32x128xf32>,
    } else {
    }
    %c0 = arith.constant 0 : index
    %c0_1 = arith.constant 0 : index
    %3 = vector.load %arg6[%c0, %c0_1] : memref<32x128xf32, #tpu.memory_space<vmem>>, vector<32x128xf32>
    %c0_2 = arith.constant 0 : index
    %c0_3 = arith.constant 0 : index
    %4 = vector.load %arg3[%c0_2, %c0_3] : memref<32x128xf32, #tpu.memory_space<vmem>>, vector<32x128xf32>
    %c0_4 = arith.constant 0 : index
    %c0_5 = arith.constant 0 : index
    %5 = vector.load %arg4[%c0_4, %c0_5] : memref<128x128xf32, #tpu.memory_space<vmem>>, vector<128x128xf32>
    %cst = arith.constant dense<0.000000e+00> : vector<32x128xf32>
    %6 = tpu.matmul %4, %5, %cst {dimension_numbers = #tpu.dot_dimension_numbers<[1], [0], [0], [1], [0, 0, 1, 1], [], []>} : vector<32x128xf32>, vector<128x128xf32>, vector<32x128xf32> -> vector<32x128xf32>
    %7 = arith.addf %3, %6 : vector<32x128xf32>
    %c0_6 = arith.constant 0 : index
    %c0_7 = arith.constant 0 : index
    %8 = vector.load %arg6[%c0_6, %c0_7] : memref<32x128xf32, #tpu.memory_space<vmem>>, vector<32x128xf32>
    tpu.vector_store %arg6[%c0_6, %c0_7], %7 {strides = array<i32>} : memref<32x128xf32, #tpu.memory_space<vmem>>, vector<32x128xf32>,
    return
  }
  func.func @transform_0(%arg0: i32, %arg1: i32, %arg2: i32) -> (i32, i32) {
    %c0_i32 = arith.constant 0 : i32
    return %arg0, %arg2 : i32, i32
  }
  func.func @transform_1(%arg0: i32, %arg1: i32, %arg2: i32) -> (i32, i32) {
    %c0_i32 = arith.constant 0 : i32
    return %arg2, %arg1 : i32, i32
  }
  func.func @transform_2(%arg0: i32, %arg1: i32, %arg2: i32) -> (i32, i32) {
    %c0_i32 = arith.constant 0 : i32
    %c0_i32_0 = arith.constant 0 : i32
    return %c0_i32, %arg1 : i32, i32
  }
  func.func @transform_3(%arg0: i32, %arg1: i32, %arg2: i32) -> (i32, i32) {
    %c0_i32 = arith.constant 0 : i32
    return %arg0, %arg1 : i32, i32
  }
}

</mosaic_0001>

<bundles_post_ra>
// kernel: tpu_custom_call.1
= control target key start
LH: loop header
LB: loop body
LE: loop exit
PB: predicated region body
PF: predicated region fallthrough
CT: control target
= control target key end

     0   :  { %s1452_s0 = inlined_call_operand.hbm [shape: f32[64,256], index: 0, kind: input, shape index: {}]   ;;  %s1453_s1 = inlined_call_operand.hbm [shape: f32[256,384], index: 1, kind: input, shape index: {}]   ;;  %s1454_s2 = inlined_call_operand.vmem [shape: f32[1,384], index: 2, kind: input, shape index: {}]   ;;  %s1455_s3 = inlined_call_operand.hbm [shape: f32[64,384], index: 3, kind: output, shape index: {}]  }
   0x1   :  { %1470 = sst [smem:[#allocation22_spill]] %s1452_s0 }
   0x2   :  { %1471 = sst [smem:[#allocation23_spill]] %s1454_s2 }
   0x3   :  { %1472 = sst [smem:[#allocation24_spill]] %s1455_s3 }
   0x4   :  { %8 = vsyncpa [#allocation3], 0 }
   0x5   :  { %10 = vsyncpa [#allocation3 + $0x1], 0 }
   0x6   :  { %11 = vsyncpa [#allocation6], 0 }
   0x7   :  { %13 = vsyncpa [#allocation6 + $0x1], 0 }
   0x8   :  { %14 = vsyncpa [#allocation4], 0 }
   0x9   :  { %16 = vsyncpa [#allocation4 + $0x1], 0  ;;  %s1074_s12 = smov 0   ;;  %s1076_s13 = smov 0  }
   0xa   :  { %s1078_s14 = smov 0   ;;  %s1080_s15 = smov 0  }
   0xb   :  { %s1082_s16 = smov 0   ;;  %s1084_s17 = smov 0  }
   0xc   :  { %s1086_s18 = smov 0   ;;  %s1088_s19 = smov 0  }
   0xd   :  { %s1090_s20 = smov 0   ;;  %s1092_s21 = smov 0  }
   0xe   :  { %s1094_s22 = smov 0   ;;  %s1096_s23 = smov 0  }
   0xf   :  { %s1098_s24 = smov 0   ;;  %s1100_s25 = smov 0  }
  0x10   :  { %s1102_s26 = smov 0   ;;  %s1104_s27 = smov 0  }
  0x11 LB: > { %1473 = sst [smem:[#allocation11_spill]] %s1010_s19  ;;  %s551_s28 = sadd.s32 4294967295, %s1042_s27   ;;  %s1042_s27 = sphi %s1104_s27, %s22_s27   ;;  %s1038_s26 = sphi %s1102_s26, %s1530_s26   ;;  %s1034_s25 = sphi %s1100_s25, %s1529_s25   ;;  %s1030_s24 = sphi %s1098_s24, %s1516_s24   ;;  %s1026_s23 = sphi %s1096_s23, %s1515_s23   ;;  %s1022_s22 = sphi %s1094_s22, %s1528_s22   ;;  %s1018_s21 = sphi %s1092_s21, %s1527_s21   ;;  %s1014_s20 = sphi %s1090_s20, %s1526_s20   ;;  %s1010_s19 = sphi %s1088_s19, %s1525_s19   ;;  %s1006_s18 = sphi %s1086_s18, %s1512_s18   ;;  %s1002_s17 = sphi %s1084_s17, %s1524_s17   ;;  %s998_s16 = sphi %s1082_s16, %s1523_s16   ;;  %s994_s15 = sphi %s1080_s15, %s1522_s15   ;;  %s990_s14 = sphi %s1078_s14, %s1521_s14   ;;  %s986_s13 = sphi %s1076_s13, %s1520_s13   ;;  %s982_s12 = sphi %s1074_s12, %s1519_s12  }
  0x12   : > { %1474 = sst [smem:[#allocation12_spill]] %s1018_s21  ;;  %s34_s29 = sadd.s32 1, %s1030_s24 }
  0x13   : > { %1475 = sst [smem:[#allocation13_spill]] %s1022_s22  ;;  %p1154_p0 = scmp.ge.s32.totalorder %s34_s29, 2 }
  0x14   : > { %1476 = sst [smem:[#allocation14_spill]] %s1026_s23  ;;  %p57_p1 = scmp.ne.s32.totalorder %s1014_s20, %s1010_s19 }
  0x15   : > { %1477 = sst [smem:[#allocation15_spill]] %s1030_s24  ;;  %s1532_s29 = smov (%p1154_p0, %s34_s29), 0 }
  0x16   : > { %1478 = sst [smem:[#allocation16_spill]] %s1038_s26  ;;  %p1462_p2 = scmp.eq.s32.totalorder %s1042_s27, 0 }
  0x17   : > { %1480 = sst [smem:[#allocation17_spill]] %s1532_s29  ;;  %p63_p3 = scmp.ne.s32.totalorder %s1010_s19, %s1006_s18 }
  0x18   : > { %s1170_s6 = ssub.s32 %s1030_s24, %s1532_s29  ;;  %p1172_p4 = scmp.eq.s32.totalorder %s551_s28, 0 }
  0x19   : > { %p1178_p5 = por %p1462_p2, %p57_p1  ;;  %p1182_p6 = scmp.eq.s32.totalorder %s551_s28, 11 }
  0x1a   : > { %p1188_p7 = por %p1172_p4, %p63_p3  ;;  %p685_p8 = scmp.lt.s32.totalorder %s1042_s27, 12 }
  0x1b   : > { %s169_s11 = sand.u32 1, %s1014_s20   ;;  %s575_s5 = sshll.u32 %s1038_s26, 3 }
  0x1c   : > { %s1484_s10 = scalar_select %p1188_p7, 1, 0 }
  0x1d   : > { %s555_s18 = sshll.u32 %s169_s11, 5  ;;  %s179_s4 = sadd.s32 %s1030_s24, %s575_s5 }
  0x1e   : > { %1485 = sst [smem:[#allocation18_spill]] %s1484_s10  ;;  %s173_s29 = scalar_lea.vmem [#allocation2], %s555_s18 }
  0x1f   : > { %s182_s3 = sshll.u32 %s173_s29, 4  ;;  %s558_s23 = sshll.u32 %s179_s4, 7  ;;  %s183_s3 = int_to_ptr.vmem [resolvable:$true] %s182_s3 }
  0x20   : > { %s1486_s0 = sld [smem:[#allocation22_spill]]  ;;  %p1203_p9 = pnand %p685_p8, %p1178_p5 }
  0x21   : > { %s170_s10 = scalar_lea.sflag [#allocation3], %s169_s11  ;;  %s835_s19 = scalar_lea.vmem %s183_s3, 512 }
  0x22   : > { %p824_p10 = pneg %p1203_p9  ;;  %p836_p11 = scmp.ne.s32.totalorder %s183_s3, %s835_s19 }
  0x23   : > { %s1044_s29 = smov [#allocation2]  }
  0x24   : > { %p838_p12 = pnand %p836_p11, %p824_p10  ;;  %s840_s4 = sshll.u32 %s1044_s29, 4  ;;  %s841_s4 = int_to_ptr.vmem [resolvable:$false] %s840_s4 }
  0x25   : > { %s842_s5 = scalar_lea.vmem %s841_s4, 1024  ;;  %p843_p1 = scmp.lt.s32.totalorder %s183_s3, %s841_s4 }
  0x26   : > { %s181_s28 = scalar_lea.hbm %s1486_s0, %s558_s23  ;;  %p839_p13 = pneg %p838_p12 }
  0x27   : > { %p844_p3 = scmp.lt.s32.totalorder %s842_s5, %s835_s19 }
  0x29   : > { %p845_p2 = por %p844_p3, %p843_p1 }
  0x2b   : > { %p846_p7 = pnand %p845_p2, %p839_p13 }
  0x2d   : > { %849 = shalt.err (!%p846_p7)
}
  0x2e   : > { %s1045_s2 = smov 256   ;;  %s1464_s19 = smov 128  }
  0x2f   : > { %s1465_s21 = smov 8   ;;  %p563_p2 = scmp.ge.s32.totalorder %s1042_s27, 1 }
  0x30   : > { %677 = dma.hbm_to_vmem [thread:$0]  (!%p1203_p9), %s181_s28, 512, %s183_s3, %s170_s10, %s1045_s2, %s1464_s19, %s1465_s21  }
  0x31   : > { %p219_p5 = scmp.lt.s32.totalorder %s1042_s27, 13  ;;  %s552_s8 = sadd.s32 4294967294, %s1042_s27  }
  0x32   : > { %s37_s11 = sadd.s32 1, %s1034_s25  ;;  %s78_s18 = sadd.s32 1, %s1002_s17 }
  0x33   : > { %p1215_p7 = pnand %p563_p2, %p219_p5  ;;  %s1534_s11 = smov (!%p1154_p0, %s37_s11), %s1034_s25 }
  0x34   : > { %p85_p10 = scmp.ne.s32.totalorder %s1002_s17, %s998_s16  ;;  %p91_p9 = scmp.ne.s32.totalorder %s998_s16, %s994_s15 }
  0x35   : > { %p39_p11 = scmp.ge.s32.totalorder %s1534_s11, 3  ;;  %s132_s3 = sadd.s32 1, %s990_s14 }
  0x36   : > { %p1489_p12 = scmp.eq.s32.totalorder %s1042_s27, 0  ;;  %p1238_p1 = por %p91_p9, %p1172_p4 }
  0x37   : > { %s1536_s11 = smov (%p39_p11, %s1534_s11), 0  ;;  %s1493_s30 = sadd.s32 1, %s1038_s26 }
  0x38   : > { %p1232_p13 = por %p85_p10, %p1489_p12  ;;  %1492 = sst [smem:[#allocation19_spill]] %s1536_s11 }
  0x39   : > { %s1538_s30 = smov (!%p39_p11, %s1493_s30), %s1038_s26  ;;  %s74_s15 = ssub.s32 %s1034_s25, %s1536_s11 }
  0x3a   : > { %p142_p0 = scmp.ne.s32.totalorder %s990_s14, %s986_s13  ;;  %p43_p3 = scmp.ge.s32.totalorder %s1538_s30, 2 }
  0x3b   : > { %s75_s28 = sor.u32 %s74_s15, %s1170_s6  ;;  %p148_p5 = scmp.ne.s32.totalorder %s986_s13, %s982_s12 }
  0x3c   : > { %p76_p2 = scmp.eq.s32.totalorder %s75_s28, 0  ;;  %p1254_p4 = por %p1182_p6, %p142_p0 }
  0x3d   : > { %s1540_s30 = smov (%p43_p3, %s1538_s30), 0  ;;  %p149_p11 = scmp.eq.s32.totalorder %s552_s8, 11 }
  0x3e   : > { %1495 = sst [smem:[#allocation20_spill]] %s1540_s30  ;;  %s45_s4 = ssub.s32 %s1038_s26, %s1540_s30 }
  0x3f   : > { %s1261_s29 = scalar_select %p76_p2, %s1002_s17, %s78_s18  }
  0x40   : > { %s47_s5 = sor.u32 %s1170_s6, %s45_s4  ;;  %s129_s2 = sor.u32 %s74_s15, %s45_s4 }
  0x41   : > { %p48_p10 = scmp.eq.s32.totalorder %s47_s5, 0  ;;  %p130_p9 = scmp.eq.s32.totalorder %s129_s2, 0 }
  0x42   : > { %s192_s9 = sand.u32 1, %s1002_s17   ;;  %s1496_s28 = sadd.s32 1, %s1014_s20 }
  0x43   : > { %s1272_s19 = scalar_select %p48_p10, %s1014_s20, %s1496_s28  }
  0x44   : > { %s1275_s21 = scalar_select %p130_p9, %s990_s14, %s132_s3  }
  0x45   : > { %1497 = sst [smem:[#allocation21_spill]] %s1272_s19  ;;  %p1277_p6 = por %p149_p11, %p148_p5 }
  0x46   : > { %s559_s11 = sshll.u32 %s192_s9, 7  ;;  %s666_s18 = smul.u32 48, %s1030_s24 }
  0x47   : > { %p1286_p12 = pnand %p685_p8, %p1232_p13  ;;  %s196_s15 = scalar_lea.vmem [#allocation5], %s559_s11 }
  0x48   : > { %s202_s8 = sadd.s32 %s1034_s25, %s666_s18  ;;  %s205_s4 = sshll.u32 %s196_s15, 4  ;;  %s206_s4 = int_to_ptr.vmem [resolvable:$true] %s205_s4 }
  0x49   : > { %s562_s5 = sshll.u32 %s202_s8, 7  ;;  %s193_s30 = scalar_lea.sflag [#allocation6], %s192_s9 }
  0x4a   : > { %s204_s28 = scalar_lea.hbm %s1453_s1, %s562_s5  ;;  %p852_p0 = pneg %p1286_p12 }
  0x4b   : > { %s863_s26 = scalar_lea.vmem %s206_s4, 2048  ;;  %s1048_s22 = smov [#allocation5]  }
  0x4c   : > { %p864_p3 = scmp.ne.s32.totalorder %s206_s4, %s863_s26  ;;  %s868_s24 = sshll.u32 %s1048_s22, 4  ;;  %s869_s24 = int_to_ptr.vmem [resolvable:$false] %s868_s24 }
  0x4d   : > { %s870_s19 = scalar_lea.vmem %s869_s24, 4096  ;;  %p871_p13 = scmp.lt.s32.totalorder %s206_s4, %s869_s24 }
  0x4e   : > { %p866_p2 = pnand %p864_p3, %p852_p0  ;;  %p872_p5 = scmp.lt.s32.totalorder %s870_s19, %s863_s26 }
  0x50   : > { %p867_p8 = pneg %p866_p2  ;;  %p873_p10 = por %p872_p5, %p871_p13 }
  0x52   : > { %p874_p9 = pnand %p873_p10, %p867_p8 }
  0x54   : > { %877 = shalt.err (!%p874_p9)
}
  0x55   : > { %s1049_s11 = smov 384   ;;  %s1500_s18 = smov 8  }
  0x56   : > { %s1501_s9 = smov 128   ;;  %223 = sbr.rel (%p1215_p7) target bundleno = 367 (0x16f), region = 32 }
  0x57   : > { %680 = dma.hbm_to_vmem [thread:$0]  (!%p1286_p12), %s204_s28, 2048, %s206_s4, %s193_s30, %s1049_s11, %s1501_s9, %s1500_s18  }
  0x58   : > { %s1502_s8 = sld [smem:[#allocation11_spill]] (!%p1215_p7) }
  0x59   : > { %s1503_s15 = sld [smem:[#allocation18_spill]] (!%p1215_p7) }
  0x5e   : > { %s225_s5 = sand.u32 1, %s1502_s8  }
  0x5f   : > { %s564_s3 = sshll.u32 %s225_s5, 5  ;;  %s226_s2 = scalar_lea.sflag [#allocation3], %s225_s5 }
  0x60   : > { %s1303_s22 = scalar_lea.vmem [#allocation2], %s564_s3  ;;  %p1504_p11 = scmp.ne.s32.totalorder %s1503_s15, 0 }
  0x62   : > { %969 = dma.done.wait (%p1504_p11), %s226_s2, 512  }
  0x63   : > { %971 = vsyncadd (%p1504_p11), %s226_s2, 4294966784  ;;  %s234_s24 = sand.u32 1, %s998_s16  }
  0x64   : > { %s565_s26 = sshll.u32 %s234_s24, 7  ;;  %s235_s19 = scalar_lea.sflag [#allocation6], %s234_s24 }
  0x65   : > { %s1310_s30 = scalar_lea.vmem [#allocation5], %s565_s26 }
  0x66   : > { %973 = dma.done.wait (%p1238_p1), %s235_s19, 2048  }
  0x67   : > { %975 = vsyncadd (%p1238_p1), %s235_s19, 4294965248  ;;  %s1505_s23 = sld [smem:[#allocation13_spill]]  ;;  %s266_s6 = sand.u32 1, %s986_s13  }
  0x68   : > { %s566_s4 = sshll.u32 %s266_s6, 5  ;;  %s1506_s18 = sld [smem:[#allocation23_spill]] }
  0x69   : > { %s1324_s8 = scalar_lea.vmem [#allocation7], %s566_s4  ;;  %s1507_s15 = sld [smem:[#allocation12_spill]] }
  0x6d   : > { %p271_p7 = scmp.lt.s32.totalorder %s1505_s23, 2 }
  0x6f   : > { %s1542_s23 = smov (!%p271_p7, %s1505_s23), 2  ;;  %p567_p12 = scmp.ne.s32.totalorder %s1507_s15, 0 }
  0x70   : > { %s273_s9 = scalar_lea.vmem %s1506_s18, %s1542_s23 }
  0x71   : > { %278 = sbr.rel (%p567_p12) target bundleno = 121 (0x79), region = 44 }
  0x76   : > { %v568_v0 = vld [vmem:[%s273_s9] ss:$0 sm:$0xff] }
  0x77   : > { %286 = vst [vmem:[%s1324_s8] sm:$0xff] %v568_v0  ;;  %287 = vst [vmem:[%s1324_s8 + $0x8] sm:$0xff] %v568_v0 }
  0x78   : > { %288 = vst [vmem:[%s1324_s8 + $0x10] sm:$0xff] %v568_v0  ;;  %289 = vst [vmem:[%s1324_s8 + $0x18] sm:$0xff] %v568_v0 }
  0x79 PF: > { %v313_v1 = vld [vmem:[%s1310_s30 + $0x78] sm:$0xff]  ;;  %v312_v2 = vld [vmem:[%s1310_s30 + $0x70] sm:$0xff]  ;;  %v311_v3 = vld [vmem:[%s1310_s30 + $0x68] sm:$0xff]  ;;  %s1508_s10 = sld [smem:[#allocation14_spill]]  ;;  %s423_s26 = sshll.u32 %s1324_s8, 4  ;;  %s1363_s26 = int_to_ptr.vmem [resolvable:$true] %s423_s26 }
  0x7a   : > { %596 = vmatprep.subr.mxu0 %v313_v1  ;;  %634 = vmatprep.subr.mxu1 %v313_v1  ;;  %v310_v4 = vld [vmem:[%s1310_s30 + $0x60] sm:$0xff]  ;;  %v309_v5 = vld [vmem:[%s1310_s30 + $0x58] sm:$0xff]  ;;  %v308_v6 = vld [vmem:[%s1310_s30 + $0x50] sm:$0xff]  ;;  %s1509_s5 = sld [smem:[#allocation13_spill]]  ;;  %s1371_s4 = scalar_lea.sflag [#allocation4], %s266_s6 }
  0x7b   : > { %597 = vmatpush3.msra.mxu0 %v313_v1  ;;  %650 = vmatpush3.msra.mxu1 %v313_v1  ;;  %v307_v7 = vld [vmem:[%s1310_s30 + $0x48] sm:$0xff]  ;;  %v306_v8 = vld [vmem:[%s1310_s30 + $0x40] sm:$0xff]  ;;  %v305_v9 = vld [vmem:[%s1310_s30 + $0x38] sm:$0xff]  ;;  %s878_s28 = scalar_lea.vmem %s1363_s26, 512  ;;  %s1050_s11 = smov [#allocation7]  }
  0x7c   : > { %598 = vmatprep.subr.mxu0 %v312_v2  ;;  %635 = vmatprep.subr.mxu1 %v312_v2  ;;  %v304_v10 = vld [vmem:[%s1310_s30 + $0x30] sm:$0xff]  ;;  %v303_v11 = vld [vmem:[%s1310_s30 + $0x28] sm:$0xff]  ;;  %v302_v12 = vld [vmem:[%s1310_s30 + $0x20] sm:$0xff]  ;;  %p879_p1 = scmp.ne.s32.totalorder %s1363_s26, %s878_s28  ;;  %s882_s18 = sshll.u32 %s1050_s11, 4  ;;  %s883_s18 = int_to_ptr.vmem [resolvable:$false] %s882_s18 }
  0x7d   : > { %599 = vmatpush3.msra.mxu0 %v312_v2  ;;  %651 = vmatpush3.msra.mxu1 %v312_v2  ;;  %v301_v13 = vld [vmem:[%s1310_s30 + $0x18] sm:$0xff]  ;;  %v300_v14 = vld [vmem:[%s1310_s30 + $0x10] sm:$0xff]  ;;  %v299_v15 = vld [vmem:[%s1310_s30 + $0x8] sm:$0xff]  ;;  %s884_s9 = scalar_lea.vmem %s883_s18, 1024  ;;  %p885_p2 = scmp.lt.s32.totalorder %s1363_s26, %s883_s18 }
  0x7e   : > { %600 = vmatprep.subr.mxu0 %v311_v3  ;;  %636 = vmatprep.subr.mxu1 %v311_v3  ;;  %v298_v16 = vld [vmem:[%s1310_s30] sm:$0xff]  ;;  %v296_v18 = vld [vmem:[%s1303_s22 + $0x10] sm:$0xff]  ;;  %v295_v19 = vld [vmem:[%s1303_s22 + $0x8] sm:$0xff]  ;;  %s1510_s30 = sld [smem:[#allocation24_spill]]  ;;  %p880_p0 = pnand %p879_p1, %p1254_p4 }
  0x7f   : > { %601 = vmatpush3.msra.mxu0 %v311_v3  ;;  %652 = vmatpush3.msra.mxu1 %v311_v3  ;;  %v294_v17 = vld [vmem:[%s1303_s22] sm:$0xff]  ;;  %v297_v20 = vld [vmem:[%s1303_s22 + $0x18] sm:$0xff]  ;;  %s667_s3 = smul.u32 12, %s1508_s10  ;;  %v291_v21 = vld [vmem:[%s1324_s8 + $0x8] sm:$0xff]  ;;  %p886_p8 = scmp.lt.s32.totalorder %s884_s9, %s878_s28 }
  0x80   : > { %602 = vmatprep.subr.mxu0 %v310_v4  ;;  %637 = vmatprep.subr.mxu1 %v310_v4  ;;  %v293_v22 = vld [vmem:[%s1324_s8 + $0x18] sm:$0xff]  ;;  %v290_v25 = vld [vmem:[%s1324_s8] sm:$0xff]  ;;  %v292_v26 = vld [vmem:[%s1324_s8 + $0x10] sm:$0xff]  ;;  %p881_p3 = pneg %p880_p0 }
  0x81   : > { %603 = vmatpush3.msra.mxu0 %v310_v4  ;;  %653 = vmatpush3.msra.mxu1 %v310_v4  ;;  %s420_s2 = sadd.s32 %s1509_s5, %s667_s3  ;;  %p887_p13 = por %p886_p8, %p885_p2 }
  0x82   : > { %604 = vmatprep.subr.mxu0 %v309_v5  ;;  %638 = vmatprep.subr.mxu1 %v309_v5  ;;  %s572_s24 = sshll.u32 %s420_s2, 7 }
  0x83   : > { %605 = vmatpush3.msra.mxu0 %v309_v5  ;;  %654 = vmatpush3.msra.mxu1 %v309_v5  ;;  %p888_p5 = pnand %p887_p13, %p881_p3 }
  0x84   : > { %606 = vmatprep.subr.mxu0 %v308_v6  ;;  %639 = vmatprep.subr.mxu1 %v308_v6  ;;  %s1361_s23 = scalar_lea.hbm %s1510_s30, %s572_s24 }
  0x85   : > { %607 = vmatpush3.msra.mxu0 %v308_v6  ;;  %655 = vmatpush3.msra.mxu1 %v308_v6 }
  0x86   : > { %608 = vmatprep.subr.mxu0 %v307_v7  ;;  %640 = vmatprep.subr.mxu1 %v307_v7 }
  0x87   : > { %609 = vmatpush3.msra.mxu0 %v307_v7  ;;  %656 = vmatpush3.msra.mxu1 %v307_v7 }
  0x88   : > { %610 = vmatprep.subr.mxu0 %v306_v8  ;;  %641 = vmatprep.subr.mxu1 %v306_v8 }
  0x89   : > { %611 = vmatpush3.msra.mxu0 %v306_v8  ;;  %657 = vmatpush3.msra.mxu1 %v306_v8 }
  0x8a   : > { %612 = vmatprep.subr.mxu0 %v305_v9  ;;  %642 = vmatprep.subr.mxu1 %v305_v9 }
  0x8b   : > { %613 = vmatpush3.msra.mxu0 %v305_v9  ;;  %658 = vmatpush3.msra.mxu1 %v305_v9 }
  0x8c   : > { %614 = vmatprep.subr.mxu0 %v304_v10  ;;  %643 = vmatprep.subr.mxu1 %v304_v10 }
  0x8d   : > { %615 = vmatpush3.msra.mxu0 %v304_v10  ;;  %659 = vmatpush3.msra.mxu1 %v304_v10 }
  0x8e   : > { %616 = vmatprep.subr.mxu0 %v303_v11  ;;  %644 = vmatprep.subr.mxu1 %v303_v11 }
  0x8f   : > { %617 = vmatpush3.msra.mxu0 %v303_v11  ;;  %660 = vmatpush3.msra.mxu1 %v303_v11 }
  0x90   : > { %618 = vmatprep.subr.mxu0 %v302_v12  ;;  %645 = vmatprep.subr.mxu1 %v302_v12 }
  0x91   : > { %619 = vmatpush3.msra.mxu0 %v302_v12  ;;  %661 = vmatpush3.msra.mxu1 %v302_v12 }
  0x92   : > { %620 = vmatprep.subr.mxu0 %v301_v13  ;;  %646 = vmatprep.subr.mxu1 %v301_v13 }
  0x93   : > { %621 = vmatpush3.msra.mxu0 %v301_v13  ;;  %662 = vmatpush3.msra.mxu1 %v301_v13 }
  0x94   : > { %622 = vmatprep.subr.mxu0 %v300_v14  ;;  %647 = vmatprep.subr.mxu1 %v300_v14 }
  0x95   : > { %623 = vmatpush3.msra.mxu0 %v300_v14  ;;  %663 = vmatpush3.msra.mxu1 %v300_v14 }
  0x96   : > { %624 = vmatprep.subr.mxu0 %v299_v15  ;;  %648 = vmatprep.subr.mxu1 %v299_v15 }
  0x97   : > { %625 = vmatpush3.msra.mxu0 %v299_v15  ;;  %664 = vmatpush3.msra.mxu1 %v299_v15 }
  0x98   : > { %626 = vmatprep.subr.mxu0 %v298_v16  ;;  %649 = vmatprep.subr.mxu1 %v298_v16 }
  0x99   : > { %627 = vmatpush3.msra.mxu0 %v298_v16  ;;  %665 = vmatpush3.msra.mxu1 %v298_v16 }
  0x9a   : > { %628 = vmatprep.mubr.f32.mxu0 %v294_v17  ;;  %631 = vmatprep.mubr.f32.mxu1 %v296_v18 }
  0x9b   : > { %629 = vmatmul.mubr.f32.vlgmr.msra.gmra.mxu0 %v295_v19  ;;  %632 = vmatmul.mubr.f32.vlgmr.msra.gmra.mxu1 %v297_v20 }
 0x15b   : > { %v630_v23 = vpop.f32.mrf.mxu0  ;;  %v633_v24 = vpop.f32.mrf.mxu1 }
 0x15c   : > { %v400_v27 = vadd.f32 %v630_v23, %v291_v21  ;;  %v402_v28 = vadd.f32 %v633_v24, %v293_v22 }
 0x15d   : > { %v380_v29 = vpop.f32.mrf.mxu0  ;;  %v390_v30 = vpop.f32.mrf.mxu1 }
 0x15e   : > { %404 = vst [vmem:[%s1324_s8 + $0x8] sm:$0xff] %v400_v27  ;;  %406 = vst [vmem:[%s1324_s8 + $0x18] sm:$0xff] %v402_v28  ;;  %v399_v31 = vadd.f32 %v380_v29, %v290_v25  ;;  %v401_v32 = vadd.f32 %v390_v30, %v292_v26 }
 0x160   : > { %403 = vst [vmem:[%s1324_s8] sm:$0xff] %v399_v31  ;;  %405 = vst [vmem:[%s1324_s8 + $0x10] sm:$0xff] %v401_v32 }
 0x161   : > { %891 = shalt.err (!%p888_p5)
}
 0x162   : > { %s892_s6 = scalar_lea.hbm %s1361_s23, 512  ;;  %s896_s10 = scalar_lea.hbm %s1510_s30, 3072 }
 0x163   : > { %p893_p10 = scmp.ne.s32.totalorder %s1361_s23, %s892_s6  ;;  %p897_p7 = scmp.lt.s32.totalorder %s1361_s23, %s1510_s30 }
 0x164   : > { %p898_p12 = scmp.lt.s32.totalorder %s896_s10, %s892_s6 }
 0x165   : > { %p894_p9 = pnand %p893_p10, %p1254_p4 }
 0x166   : > { %p899_p1 = por %p898_p12, %p897_p7 }
 0x167   : > { %p895_p11 = pneg %p894_p9 }
 0x169   : > { %p900_p0 = pnand %p899_p1, %p895_p11 }
 0x16b   : > { %903 = shalt.err (!%p900_p0)
}
 0x16c   : > { %s1051_s2 = smov 128   ;;  %s1052_s24 = smov 384  }
 0x16d   : > { %s1053_s22 = smov 8  }
 0x16e   : > { %672 = dma.vmem_to_hbm [thread:$0]  (%p1254_p4), %s1363_s26, 512, %s1361_s23, %s1371_s4, %s1051_s2, %s1052_s24, %s1053_s22  }
 0x16f PF: > { %p686_p3 = scmp.ge.s32.totalorder %s1042_s27, 2  ;;  %s438_s19 = sand.u32 1, %s982_s12  }
 0x170   : > { %s439_s28 = scalar_lea.sflag [#allocation4], %s438_s19 }
 0x171   : > { %p682_p2 = pnand %p686_p3, %p1277_p6 }
 0x173   : > { %p683_p8 = pneg %p682_p2 }
 0x175   : > { %977 = dma.done.wait (%p683_p8), %s439_s28, 512  }
 0x176   : > { %979 = vsyncadd (%p683_p8), %s439_s28, 4294966784  ;;  %s22_s27 = sadd.s32 1, %s1042_s27   ;;  %s1512_s18 = sld [smem:[#allocation11_spill]] }
 0x177   : > { %p1399_p13 = scmp.ge.s32.totalorder %s22_s27, 14   ;;  %s1513_s0 = sld [smem:[#allocation21_spill]] }
 0x178   : > { %s1514_s7 = sld [smem:[#allocation15_spill]]  ;;  %s1519_s12 = smov %s986_s13 }
 0x179   : > { %s1515_s23 = sld [smem:[#allocation16_spill]]  ;;  %s1520_s13 = smov %s990_s14 }
 0x17a   : > { %s1516_s24 = sld [smem:[#allocation17_spill]]  ;;  %s1521_s14 = smov %s1275_s21 }
 0x17b   : > { %s1517_s26 = sld [smem:[#allocation19_spill]]  ;;  %s1522_s15 = smov %s998_s16 }
 0x17c   : > { %s1518_s4 = sld [smem:[#allocation20_spill]]  ;;  %s1523_s16 = smov %s1002_s17 }
 0x17d   : > { %s1524_s17 = smov %s1261_s29  ;;  %s1525_s19 = smov %s1014_s20 }
 0x17e   : > { %s1526_s20 = smov %s1513_s0  ;;  %s1527_s21 = smov %s1514_s7 }
 0x17f   : > { %s1528_s22 = smov %s1034_s25  ;;  %21 = sbr.rel (!%p1399_p13) target bundleno = 17 (0x11), region = 97 }
 0x181   : > { %s1529_s25 = smov %s1517_s26 }
 0x182   : > { %s1530_s26 = smov %s1518_s4 }
 0x184   :  { %444 = vsyncpa [#allocation3], 1 }
 0x185   :  { %446 = vsyncpa [#allocation3 + $0x1], 1 }
 0x186   :  { %447 = vsyncpa [#allocation6], 1 }
 0x187   :  { %449 = vsyncpa [#allocation6 + $0x1], 1 }
 0x188   :  { %450 = vsyncpa [#allocation4], 1 }
 0x189   :  { %452 = vsyncpa [#allocation4 + $0x1], 1 }

</bundles_post_ra>
